<compile_context>
chip_gen: v7x
topology: tpu7x:2x2x1
jax: 0.10.0
libtpu: 0.0.40
codegen_flags: <defaults>
</compile_context>

<pallas_src>
import functools

import jax
import jax.numpy as jnp
from jax.experimental import pallas as pl
from jax.experimental.pallas import tpu as pltpu

LANE = 128
_MIB = 1024 * 1024


def _round_up(n, m):
    return ((n + m - 1) // m) * m


def _row_granule(dtype):
    isz = jnp.dtype(dtype).itemsize
    if isz >= 4:
        return 8
    if isz == 2:
        return 16
    return 32


def _vmem_limits():
    """Generation-aware (vmem_limit_bytes, tile budget) in bytes."""
    cap = 64 * _MIB  # conservative fallback == v7x per-TC VMEM
    try:
        cap = int(pltpu.get_tpu_info().vmem_capacity_bytes)
    except Exception:
        pass
    limit = min(cap - 16 * _MIB, int(cap * 0.78))  # 48 MiB on v7x, ~100 MiB on v5e/v6e
    limit = max(limit, 32 * _MIB)
    budget = max(limit - 8 * _MIB, 24 * _MIB)      # headroom for compiler scratch
    return limit, budget


def _pad2d(a, rows, cols):
    """Zero-pad a 2-D array up to (rows, cols)."""
    r, c = a.shape
    if r == rows and c == cols:
        return a
    return jnp.pad(a, ((0, rows - r), (0, cols - c)))


def _spec(shape, index_map, single_buffer=False):
    if single_buffer:
        # Grid-invariant operand: one VMEM buffer instead of the default two.
        return pl.BlockSpec(shape, index_map, pipeline_mode=pl.Buffered(1))
    return pl.BlockSpec(shape, index_map)


def _pick_fused_tiles(rows, din_p, dout_p, x_isz, w_isz, out_isz, y_isz,
                      budget, row_granule, max_tn=None):
    """Pick (tm, tn) so double-buffered tiles + f32 intermediates fit VMEM."""
    base = 2 * din_p * 4                          # gamma + beta (single-buffered)
    tn_cap = dout_p if max_tn is None else min(dout_p, _round_up(max_tn, LANE))

    tn = LANE
    for cand in (dout_p, 2048, 1024, 512, 256, 128):
        if cand > tn_cap or cand % LANE:
            continue
        w_bufs = 1 if cand == dout_p else 2       # resident (single) vs pipelined W
        if base + w_bufs * din_p * cand * w_isz <= budget // 2:
            tn = cand
            break
    w_bufs = 1 if tn == dout_p else 2
    resident = base + w_bufs * (din_p * tn * w_isz + tn * 4)

    tm = row_granule
    for cand in (1024, 512, 384, 256, 128, 64, 32, 16, 8):
        if cand % row_granule:
            continue
        tile = (2 * cand * din_p * x_isz          # x tile, double-buffered
                + cand * din_p * y_isz            # staged LayerNorm(x) scratch
                + 2 * cand * tn * out_isz         # out tile, double-buffered
                + cand * (2 * din_p + tn) * 4)    # f32 compute intermediates
        if resident + tile <= budget:
            tm = cand
            break
    tm = min(tm, _round_up(max(rows, row_granule), row_granule))
    return max(tm, row_granule), tn
    # TODO(synk): for very large Din (input tile alone > budget) add a K-tiled
    # reduction axis; not needed for typical transformer widths.


def _pick_ln_rows(rows, din_p, x_isz, out_isz, budget, row_granule):
    base = 2 * din_p * 4                          # gamma + beta (single-buffered)
    tm = row_granule
    for cand in (1024, 512, 256, 128, 64, 32, 16, 8):
        if cand % row_granule:
            continue
        tile = (2 * cand * din_p * x_isz          # x tile, double-buffered
                + 2 * cand * din_p * out_isz      # out tile, double-buffered
                + 2 * cand * din_p * 4)           # f32 intermediates
        if base + tile <= budget:
            tm = cand
            break
    tm = min(tm, _round_up(max(rows, row_granule), row_granule))
    return max(tm, row_granule)


# ----------------------------------------------------------------------------
# Shared LayerNorm math (f32). Pad columns of x/gamma/beta are zero.
# ----------------------------------------------------------------------------
def _layernorm_f32(x, gamma, beta, eps, d_actual, masked_variance):
    dp = x.shape[-1]
    inv_d = 1.0 / d_actual
    mean = jnp.sum(x, axis=-1, keepdims=True) * inv_d      # pad cols are zero
    if d_actual == dp:
        xc = x - mean
        var = jnp.sum(xc * xc, axis=-1, keepdims=True) * inv_d
    elif masked_variance:
        col = jax.lax.broadcasted_iota(jnp.int32, x.shape, dimension=1)
        xc = jnp.where(col < d_actual, x - mean, 0.0)
        var = jnp.sum(xc * xc, axis=-1, keepdims=True) * inv_d
    else:
        # Pad columns are zero -> sum(x*x) is exact: var = E[x^2] - mean^2.
        var = jnp.maximum(
            jnp.sum(x * x, axis=-1, keepdims=True) * inv_d - mean * mean, 0.0)
        xc = x - mean                                       # pad cols hit gamma==0
    inv = jax.lax.rsqrt(var + eps)
    return xc * inv * gamma + beta


# ----------------------------------------------------------------------------
# Fused PreNorm(Linear): grid = (row tiles, output-column tiles).
# LayerNorm is computed once per row tile (at j == 0) into a VMEM scratch.
# ----------------------------------------------------------------------------
def _prenorm_linear_kernel(x_ref, gamma_ref, beta_ref, w_ref, b_ref, o_ref,
                           y_ref, *, eps, d_actual, masked_variance):
    @pl.when(pl.program_id(1) == 0)
    def _():
        y = _layernorm_f32(x_ref[...].astype(jnp.float32),
                           gamma_ref[...].astype(jnp.float32),
                           beta_ref[...].astype(jnp.float32),
                           eps, d_actual, masked_variance)
        y_ref[...] = y.astype(y_ref.dtype)

    acc = jnp.dot(y_ref[...], w_ref[...], preferred_element_type=jnp.float32)
    o_ref[...] = (acc + b_ref[...].astype(jnp.float32)).astype(o_ref.dtype)


def pre_norm_linear(x, gamma, beta, w, b, *, eps=1e-5, use_bf16_mxu=False,
                    masked_variance=False, max_tn=None):
    """PreNorm with fn = Linear(Din -> Dout), fused into a single kernel."""
    orig_shape = x.shape
    din = orig_shape[-1]
    dout = w.shape[1]
    x2 = x.reshape(-1, din)
    rows = x2.shape[0]

    mxu_bf16 = use_bf16_mxu or jnp.dtype(w.dtype) == jnp.dtype(jnp.bfloat16)
    w_in = w.astype(jnp.bfloat16) if mxu_bf16 else w
    y_dtype = jnp.bfloat16 if mxu_bf16 else jnp.float32

    din_p = _round_up(din, LANE)
    dout_p = _round_up(dout, LANE)
    granule = _row_granule(x.dtype)
    rows_g = _round_up(rows, granule)            # sublane-granule pad only

    x_isz = jnp.dtype(x.dtype).itemsize
    w_isz = jnp.dtype(w_in.dtype).itemsize
    out_isz = x_isz
    y_isz = jnp.dtype(y_dtype).itemsize

    limit, budget = _vmem_limits()
    tm, tn = _pick_fused_tiles(rows_g, din_p, dout_p, x_isz, w_isz, out_isz,
                               y_isz, budget, granule, max_tn=max_tn)

    grid_m = pl.cdiv(rows_g, tm)
    grid_n = pl.cdiv(dout_p, tn)
    w_single = grid_n == 1                       # W / bias grid-invariant

    x_p = _pad2d(x2, rows_g, din_p)
    gamma_p = _pad2d(gamma.reshape(1, din), 1, din_p)
    beta_p = _pad2d(beta.reshape(1, din), 1, din_p)
    w_p = _pad2d(w_in, din_p, dout_p)
    b_p = _pad2d(b.reshape(1, dout), 1, dout_p)

    cost = pl.CostEstimate(
        flops=2 * rows * din * dout + 8 * rows * din,
        transcendentals=rows,
        bytes_accessed=(rows * din * x_isz + din * dout * w_isz
                        + rows * dout * out_isz + (2 * din + dout) * 4),
    )

    out = pl.pallas_call(
        functools.partial(_prenorm_linear_kernel, eps=eps, d_actual=din,
                          masked_variance=masked_variance),
        out_shape=jax.ShapeDtypeStruct((rows_g, dout_p), x.dtype),
        grid_spec=pltpu.PrefetchScalarGridSpec(
            num_scalar_prefetch=0,
            grid=(grid_m, grid_n),
            in_specs=[
                _spec((tm, din_p), lambda i, j: (i, 0)),                          # x row tile
                _spec((1, din_p), lambda i, j: (0, 0), single_buffer=True),       # gamma
                _spec((1, din_p), lambda i, j: (0, 0), single_buffer=True),       # beta
                _spec((din_p, tn), lambda i, j: (0, j), single_buffer=w_single),  # W
                _spec((1, tn), lambda i, j: (0, j), single_buffer=w_single),      # bias
            ],
            out_specs=_spec((tm, tn), lambda i, j: (i, j)),
            scratch_shapes=[pltpu.VMEM((tm, din_p), y_dtype)],                    # staged LN(x)
        ),
        compiler_params=pltpu.CompilerParams(
            dimension_semantics=("parallel", "arbitrary"),
            vmem_limit_bytes=limit,
        ),
        cost_estimate=cost,
    )(x_p, gamma_p, beta_p, w_p, b_p)

    return out[:rows, :dout].reshape(orig_shape[:-1] + (dout,))


# ----------------------------------------------------------------------------
# Standalone LayerNorm kernel (generic PreNorm path for arbitrary `fn`).
# ----------------------------------------------------------------------------
def _layernorm_kernel(x_ref, gamma_ref, beta_ref, o_ref, *, eps, d_actual,
                      masked_variance):
    y = _layernorm_f32(x_ref[...].astype(jnp.float32),
                       gamma_ref[...].astype(jnp.float32),
                       beta_ref[...].astype(jnp.float32),
                       eps, d_actual, masked_variance)
    o_ref[...] = y.astype(o_ref.dtype)


def layernorm(x, gamma, beta, *, eps=1e-5, masked_variance=False):
    """LayerNorm over the last dim (PyTorch nn.LayerNorm semantics)."""
    orig_shape = x.shape
    din = orig_shape[-1]
    x2 = x.reshape(-1, din)
    rows = x2.shape[0]

    din_p = _round_up(din, LANE)
    granule = _row_granule(x.dtype)
    rows_g = _round_up(rows, granule)
    x_isz = jnp.dtype(x.dtype).itemsize

    limit, budget = _vmem_limits()
    tm = _pick_ln_rows(rows_g, din_p, x_isz, x_isz, budget, granule)

    x_p = _pad2d(x2, rows_g, din_p)
    gamma_p = _pad2d(gamma.reshape(1, din), 1, din_p)
    beta_p = _pad2d(beta.reshape(1, din), 1, din_p)

    cost = pl.CostEstimate(
        flops=8 * rows * din,
        transcendentals=rows,
        bytes_accessed=2 * rows * din * x_isz + 2 * din * 4,
    )

    out = pl.pallas_call(
        functools.partial(_layernorm_kernel, eps=eps, d_actual=din,
                          masked_variance=masked_variance),
        out_shape=jax.ShapeDtypeStruct((rows_g, din_p), x.dtype),
        grid_spec=pltpu.PrefetchScalarGridSpec(
            num_scalar_prefetch=0,
            grid=(pl.cdiv(rows_g, tm),),
            in_specs=[
                _spec((tm, din_p), lambda i: (i, 0)),
                _spec((1, din_p), lambda i: (0, 0), single_buffer=True),
                _spec((1, din_p), lambda i: (0, 0), single_buffer=True),
            ],
            out_specs=_spec((tm, din_p), lambda i: (i, 0)),
        ),
        compiler_params=pltpu.CompilerParams(
            dimension_semantics=("parallel",),
            vmem_limit_bytes=limit,
        ),
        cost_estimate=cost,
    )(x_p, gamma_p, beta_p)

    return out[:rows, :din].reshape(orig_shape)


# ----------------------------------------------------------------------------
# PreNorm wrapper matching the PyTorch forward: fn(LayerNorm(x), *tmp)
# (use pre_norm_linear() for the fused fast path when fn is a Linear).
# ----------------------------------------------------------------------------
def pre_norm(x, *tmp, fn, gamma, beta, eps=1e-5):
    y = layernorm(x, gamma, beta, eps=eps)
    if tmp != ():
        return fn(y, tmp[0])
    return fn(y)


# ----------------------------------------------------------------------------
# Pure-JAX references for correctness checks.
# ----------------------------------------------------------------------------
def _ref_layernorm(x, gamma, beta, eps=1e-5):
    xf = x.astype(jnp.float32)
    mean = jnp.mean(xf, axis=-1, keepdims=True)
    var = jnp.mean((xf - mean) ** 2, axis=-1, keepdims=True)
    return (xf - mean) / jnp.sqrt(var + eps) * gamma + beta


def _ref_pre_norm_linear(x, gamma, beta, w, b, eps=1e-5):
    return _ref_layernorm(x, gamma, beta, eps) @ w + b


if __name__ == "__main__":
    key = jax.random.PRNGKey(0)
    B, S, D = 2, 8, 32

    k_x, k_w, k_b, k_t, k_w2, k_b2 = jax.random.split(key, 6)
    x = jax.random.normal(k_x, (B, S, D), dtype=jnp.float32)

    # LayerNorm params (PyTorch init: gamma=1, beta=0)
    gamma = jnp.ones((D,), dtype=jnp.float32)
    beta = jnp.zeros((D,), dtype=jnp.float32)

    # Deterministic params for the wrapped fn (a Linear(dim, dim)).
    w = jax.random.normal(k_w, (D, D), dtype=jnp.float32) * 0.02
    b = jax.random.normal(k_b, (D,), dtype=jnp.float32) * 0.01

    # 1) Fused fast path (single N tile -> resident, single-buffered W).
    out = jax.block_until_ready(pre_norm_linear(x, gamma, beta, w, b))
    ref = _ref_pre_norm_linear(x, gamma, beta, w, b)
    assert out.shape == (B, S, D)
    assert jnp.allclose(out, ref, atol=1e-4, rtol=1e-4), "fused PreNorm mismatch"

    # 2) Fused path with wider Dout and a forced small N tile -> exercises the
    #    column-tiled grid axis + staged-LN scratch path.
    D2 = 320
    w2 = jax.random.normal(k_w2, (D, D2), dtype=jnp.float32) * 0.02
    b2 = jax.random.normal(k_b2, (D2,), dtype=jnp.float32) * 0.01
    out2 = jax.block_until_ready(pre_norm_linear(x, gamma, beta, w2, b2, max_tn=128))
    ref2 = _ref_pre_norm_linear(x, gamma, beta, w2, b2)
    assert out2.shape == (B, S, D2)
    assert jnp.allclose(out2, ref2, atol=1e-4, rtol=1e-4), "N-tiled PreNorm mismatch"

    # 3) Generic path exercising the `*tmp` branch of forward: fn(norm(x), tmp[0]).
    tmp0 = jax.random.normal(k_t, (B, S, D), dtype=jnp.float32)
    out3 = jax.block_until_ready(
        pre_norm(x, tmp0, fn=lambda y, t: y + t, gamma=gamma, beta=beta))
    ref3 = _ref_layernorm(x, gamma, beta) + tmp0
    assert jnp.allclose(out3, ref3, atol=1e-4, rtol=1e-4), "generic PreNorm mismatch"

    print("KERNEL_OK")
</pallas_src>

<mosaic_0001>
module attributes {stable_mosaic.version = 11 : i64} {
  func.func @_prenorm_linear_kernel(%arg0: i32, %arg1: i32, %arg2: memref<16x128xf32, #tpu.memory_space<vmem>>, %arg3: memref<1x128xf32, #tpu.memory_space<vmem>>, %arg4: memref<1x128xf32, #tpu.memory_space<vmem>>, %arg5: memref<128x128xf32, #tpu.memory_space<vmem>>, %arg6: memref<1x128xf32, #tpu.memory_space<vmem>>, %arg7: memref<16x128xf32, #tpu.memory_space<vmem>>, %arg8: memref<16x128xf32, #tpu.memory_space<vmem>>) attributes {dimension_semantics = [#tpu.dimension_semantics<parallel>, #tpu.dimension_semantics<arbitrary>], iteration_bounds = array<i64: 1, 1>, scalar_prefetch = 0 : i64, scratch_operands = 1 : i64, tpu.core_type = #tpu.core_type<tc>, window_params = [{transform_indices = @transform_0, window_bounds = array<i64: 16, 128>}, {pipeline_mode = #tpu.pipeline_mode<synchronous>, transform_indices = @transform_1, window_bounds = array<i64: 1, 128>}, {pipeline_mode = #tpu.pipeline_mode<synchronous>, transform_indices = @transform_2, window_bounds = array<i64: 1, 128>}, {pipeline_mode = #tpu.pipeline_mode<synchronous>, transform_indices = @transform_3, window_bounds = array<i64: 128, 128>}, {pipeline_mode = #tpu.pipeline_mode<synchronous>, transform_indices = @transform_4, window_bounds = array<i64: 1, 128>}, {transform_indices = @transform_5, window_bounds = array<i64: 16, 128>}]} {
    %c0_i32 = arith.constant 0 : i32
    %0 = arith.cmpi eq, %arg1, %c0_i32 : i32
    %1 = arith.extui %0 : i1 to i32
    %c0_i32_0 = arith.constant 0 : i32
    %2 = arith.cmpi ne, %1, %c0_i32_0 : i32
    scf.if %2 {
      %c0_8 = arith.constant 0 : index
      %c0_9 = arith.constant 0 : index
      %10 = vector.load %arg2[%c0_8, %c0_9] : memref<16x128xf32, #tpu.memory_space<vmem>>, vector<16x128xf32>
      %c0_10 = arith.constant 0 : index
      %c0_11 = arith.constant 0 : index
      %11 = vector.load %arg3[%c0_10, %c0_11] : memref<1x128xf32, #tpu.memory_space<vmem>>, vector<1x128xf32>
      %c0_12 = arith.constant 0 : index
      %c0_13 = arith.constant 0 : index
      %12 = vector.load %arg4[%c0_12, %c0_13] : memref<1x128xf32, #tpu.memory_space<vmem>>, vector<1x128xf32>
      %cst_14 = arith.constant dense<0.000000e+00> : vector<16xf32>
      %13 = vector.multi_reduction <add>, %10, %cst_14 [1] : vector<16x128xf32> to vector<16xf32>
      %14 = vector.shape_cast %13 : vector<16xf32> to vector<16x1xf32>
      %cst_15 = arith.constant 3.125000e-02 : f32
      %15 = vector.broadcast %cst_15 : f32 to vector<16x1xf32>
      %16 = arith.mulf %14, %15 : vector<16x1xf32>
      %17 = arith.mulf %10, %10 : vector<16x128xf32>
      %cst_16 = arith.constant dense<0.000000e+00> : vector<16xf32>
      %18 = vector.multi_reduction <add>, %17, %cst_16 [1] : vector<16x128xf32> to vector<16xf32>
      %19 = vector.shape_cast %18 : vector<16xf32> to vector<16x1xf32>
      %cst_17 = arith.constant 3.125000e-02 : f32
      %20 = vector.broadcast %cst_17 : f32 to vector<16x1xf32>
      %21 = arith.mulf %19, %20 : vector<16x1xf32>
      %22 = arith.mulf %16, %16 : vector<16x1xf32>
      %23 = arith.subf %21, %22 : vector<16x1xf32>
      %cst_18 = arith.constant 0.000000e+00 : f32
      %24 = vector.broadcast %cst_18 : f32 to vector<16x1xf32>
      %25 = arith.maximumf %23, %24 : vector<16x1xf32>
      %26 = vector.broadcast %16 : vector<16x1xf32> to vector<16x128xf32>
      %27 = arith.subf %10, %26 : vector<16x128xf32>
      %cst_19 = arith.constant 9.99999974E-6 : f32
      %28 = vector.broadcast %cst_19 : f32 to vector<16x1xf32>
      %29 = arith.addf %25, %28 : vector<16x1xf32>
      %30 = math.rsqrt %29 : vector<16x1xf32>
      %31 = vector.broadcast %30 : vector<16x1xf32> to vector<16x128xf32>
      %32 = arith.mulf %27, %31 : vector<16x128xf32>
      %33 = vector.broadcast %11 : vector<1x128xf32> to vector<16x128xf32>
      %34 = arith.mulf %32, %33 : vector<16x128xf32>
      %35 = vector.broadcast %12 : vector<1x128xf32> to vector<16x128xf32>
      %36 = arith.addf %34, %35 : vector<16x128xf32>
      %c0_20 = arith.constant 0 : index
      %c0_21 = arith.constant 0 : index
      %37 = vector.load %arg8[%c0_20, %c0_21] : memref<16x128xf32, #tpu.memory_space<vmem>>, vector<16x128xf32>
      tpu.vector_store %arg8[%c0_20, %c0_21], %36 {strides = array<i32>} : memref<16x128xf32, #tpu.memory_space<vmem>>, vector<16x128xf32>,
    } else {
    }
    %c0 = arith.constant 0 : index
    %c0_1 = arith.constant 0 : index
    %3 = vector.load %arg8[%c0, %c0_1] : memref<16x128xf32, #tpu.memory_space<vmem>>, vector<16x128xf32>
    %c0_2 = arith.constant 0 : index
    %c0_3 = arith.constant 0 : index
    %4 = vector.load %arg5[%c0_2, %c0_3] : memref<128x128xf32, #tpu.memory_space<vmem>>, vector<128x128xf32>
    %cst = arith.constant dense<0.000000e+00> : vector<16x128xf32>
    %5 = tpu.matmul %3, %4, %cst {dimension_numbers = #tpu.dot_dimension_numbers<[1], [0], [0], [1], [0, 0, 1, 1], [], []>} : vector<16x128xf32>, vector<128x128xf32>, vector<16x128xf32> -> vector<16x128xf32>
    %c0_4 = arith.constant 0 : index
    %c0_5 = arith.constant 0 : index
    %6 = vector.load %arg6[%c0_4, %c0_5] : memref<1x128xf32, #tpu.memory_space<vmem>>, vector<1x128xf32>
    %7 = vector.broadcast %6 : vector<1x128xf32> to vector<16x128xf32>
    %8 = arith.addf %5, %7 : vector<16x128xf32>
    %c0_6 = arith.constant 0 : index
    %c0_7 = arith.constant 0 : index
    %9 = vector.load %arg7[%c0_6, %c0_7] : memref<16x128xf32, #tpu.memory_space<vmem>>, vector<16x128xf32>
    tpu.vector_store %arg7[%c0_6, %c0_7], %8 {strides = array<i32>} : memref<16x128xf32, #tpu.memory_space<vmem>>, vector<16x128xf32>,
    return
  }
  func.func @transform_0(%arg0: i32, %arg1: i32) -> (i32, i32) {
    %c0_i32 = arith.constant 0 : i32
    %c0_i32_0 = arith.constant 0 : i32
    return %arg0, %c0_i32 : i32, i32
  }
  func.func @transform_1(%arg0: i32, %arg1: i32) -> (i32, i32) {
    %c0_i32 = arith.constant 0 : i32
    %c0_i32_0 = arith.constant 0 : i32
    %c0_i32_1 = arith.constant 0 : i32
    return %c0_i32, %c0_i32_0 : i32, i32
  }
  func.func @transform_2(%arg0: i32, %arg1: i32) -> (i32, i32) {
    %c0_i32 = arith.constant 0 : i32
    %c0_i32_0 = arith.constant 0 : i32
    %c0_i32_1 = arith.constant 0 : i32
    return %c0_i32, %c0_i32_0 : i32, i32
  }
  func.func @transform_3(%arg0: i32, %arg1: i32) -> (i32, i32) {
    %c0_i32 = arith.constant 0 : i32
    %c0_i32_0 = arith.constant 0 : i32
    return %c0_i32, %arg1 : i32, i32
  }
  func.func @transform_4(%arg0: i32, %arg1: i32) -> (i32, i32) {
    %c0_i32 = arith.constant 0 : i32
    %c0_i32_0 = arith.constant 0 : i32
    return %c0_i32, %arg1 : i32, i32
  }
  func.func @transform_5(%arg0: i32, %arg1: i32) -> (i32, i32) {
    %c0_i32 = arith.constant 0 : i32
    return %arg0, %arg1 : i32, i32
  }
}

</mosaic_0001>

<bundles_post_ra>
// kernel: tpu_custom_call.1
= control target key start
LH: loop header
LB: loop body
LE: loop exit
PB: predicated region body
PF: predicated region fallthrough
CT: control target
= control target key end

     0   :  { %10 = vsyncpa [#allocation4], 0  ;;  %s493_s0 = inlined_call_operand.hbm [shape: f32[16,128], index: 0, kind: input, shape index: {}]   ;;  %s494_s1 = inlined_call_operand.vmem [shape: f32[1,128], index: 1, kind: input, shape index: {}]   ;;  %s495_s2 = inlined_call_operand.vmem [shape: f32[1,128], index: 2, kind: input, shape index: {}]   ;;  %s496_s3 = inlined_call_operand.hbm [shape: f32[128,128], index: 3, kind: input, shape index: {}]   ;;  %s497_s4 = inlined_call_operand.vmem [shape: f32[1,128], index: 4, kind: input, shape index: {}]   ;;  %s498_s5 = inlined_call_operand.hbm [shape: f32[16,128], index: 5, kind: output, shape index: {}]  }
   0x1   :  { %11 = vsyncpa [#allocation7], 0 }
   0x2   :  { %12 = vsyncpa [#allocation5], 0  ;;  %s392_s18 = smov [#allocation3]   ;;  %s320_s22 = scalar_lea.hbm %s493_s0, 256 }
   0x3   :  { %s18_s19 = sshll.u32 %s392_s18, 4  ;;  %p321_p0 = scmp.ne.s32.totalorder %s493_s0, %s320_s22  ;;  %s19_s19 = int_to_ptr.vmem [resolvable:$true] %s18_s19 }
   0x4   :  { %p324_p1 = scmp.lt.u32.totalorder %s320_s22, %s493_s0 }
   0x6   :  { %p326_p2 = pnand %p324_p1, %p321_p0 }
   0x8   :  { %329 = shalt.err (!%p326_p2)
}
   0x9   :  { %s330_s27 = scalar_lea.vmem %s19_s19, 256  ;;  %p335_p4 = scmp.lt.s32.totalorder %s19_s19, %s19_s19 }
   0xa   :  { %p331_p3 = scmp.ne.s32.totalorder %s19_s19, %s330_s27  ;;  %p336_p5 = scmp.lt.s32.totalorder %s330_s27, %s330_s27 }
   0xc   :  { %p337_p6 = por %p336_p5, %p335_p4 }
   0xe   :  { %p338_p7 = pnand %p337_p6, %p331_p3 }
  0x10   :  { %341 = shalt.err (!%p338_p7)
}
  0x11   :  { %s393_s28 = smov 128   ;;  %s394_s29 = smov 8  }
  0x12   :  { %24 = dma.hbm_to_vmem [thread:$0]  %s493_s0, 256, %s19_s19, [#allocation4], %s393_s28, %s393_s28, %s394_s29  }
  0x13   :  { %s395_s7 = smov [#allocation6]   ;;  %s342_s11 = scalar_lea.hbm %s496_s3, 2048 }
  0x14   :  { %s34_s8 = sshll.u32 %s395_s7, 4  ;;  %p343_p8 = scmp.ne.s32.totalorder %s496_s3, %s342_s11  ;;  %s35_s8 = int_to_ptr.vmem [resolvable:$true] %s34_s8 }
  0x15   :  { %p346_p9 = scmp.lt.u32.totalorder %s342_s11, %s496_s3 }
  0x17   :  { %p348_p10 = pnand %p346_p9, %p343_p8 }
  0x19   :  { %351 = shalt.err (!%p348_p10)
}
  0x1a   :  { %s352_s16 = scalar_lea.vmem %s35_s8, 2048  ;;  %p357_p12 = scmp.lt.s32.totalorder %s35_s8, %s35_s8 }
  0x1b   :  { %p353_p11 = scmp.ne.s32.totalorder %s35_s8, %s352_s16  ;;  %p358_p13 = scmp.lt.s32.totalorder %s352_s16, %s352_s16 }
  0x1d   :  { %p359_p0 = por %p358_p13, %p357_p12 }
  0x1f   :  { %p360_p1 = pnand %p359_p0, %p353_p11 }
  0x21   :  { %363 = shalt.err (!%p360_p1)
}
  0x22   :  { %40 = dma.hbm_to_vmem [thread:$0]  %s496_s3, 2048, %s35_s8, [#allocation7], %s393_s28, %s393_s28, %s394_s29  }
  0x23   :  { %386 = dma.done.wait [#allocation4], 256  }
  0x24   :  { %387 = vsyncadd [#allocation4], 4294967040 }
  0x25   :  { %388 = dma.done.wait [#allocation7], 2048  }
  0x26   :  { %389 = vsyncadd [#allocation7], 4294965248  ;;  %v457_v0 = vld [vmem:[#allocation3] sm:$0xff]  ;;  %v459_v1 = vld [vmem:[#allocation3 + $0x8] sm:$0xff] }
  0x27   :  { %v105_v2 = vld [vmem:[#allocation6] sm:$0xff]  ;;  %57 = vadd.xlane.f32.xlu0 %v457_v0  ;;  %v63_v3 = vmul.f32 %v457_v0, %v457_v0  ;;  %v106_v4 = vld [vmem:[#allocation6 + $0x8] sm:$0xff]  ;;  %v64_v6 = vmul.f32 %v459_v1, %v459_v1  ;;  %v107_v7 = vld [vmem:[#allocation6 + $0x10] sm:$0xff] }
  0x28   :  { %v279_v5 = vpack.c.bf16 %v106_v4, %v105_v2  ;;  %v108_v8 = vld [vmem:[#allocation6 + $0x18] sm:$0xff]  ;;  %v109_v10 = vld [vmem:[#allocation6 + $0x20] sm:$0xff]  ;;  %v110_v11 = vld [vmem:[#allocation6 + $0x28] sm:$0xff] }
  0x29   :  { %65 = vadd.xlane.f32.xlu1 %v63_v3  ;;  %v283_v9 = vpack.c.bf16 %v108_v8, %v107_v7  ;;  %v287_v12 = vpack.c.bf16 %v110_v11, %v109_v10  ;;  %v111_v13 = vld [vmem:[#allocation6 + $0x30] sm:$0xff]  ;;  %v112_v14 = vld [vmem:[#allocation6 + $0x38] sm:$0xff]  ;;  %v113_v16 = vld [vmem:[#allocation6 + $0x40] sm:$0xff] }
  0x2a   :  { %280 = vmatprep.subr.bf16.mxu0 %v279_v5  ;;  %v291_v15 = vpack.c.bf16 %v112_v14, %v111_v13  ;;  %v114_v17 = vld [vmem:[#allocation6 + $0x48] sm:$0xff]  ;;  %v115_v19 = vld [vmem:[#allocation6 + $0x50] sm:$0xff]  ;;  %v116_v20 = vld [vmem:[#allocation6 + $0x58] sm:$0xff] }
  0x2b   :  { %59 = vadd.xlane.f32.xlu0 %v459_v1  ;;  %282 = vmatpush3.bf16.msra.mxu0 %v279_v5  ;;  %v295_v18 = vpack.c.bf16 %v114_v17, %v113_v16  ;;  %v117_v21 = vld [vmem:[#allocation6 + $0x60] sm:$0xff]  ;;  %v299_v22 = vpack.c.bf16 %v116_v20, %v115_v19  ;;  %v118_v23 = vld [vmem:[#allocation6 + $0x68] sm:$0xff]  ;;  %v119_v25 = vld [vmem:[#allocation6 + $0x70] sm:$0xff] }
  0x2c   :  { %284 = vmatprep.subr.bf16.mxu0 %v283_v9  ;;  %v303_v24 = vpack.c.bf16 %v118_v23, %v117_v21  ;;  %v120_v26 = vld [vmem:[#allocation6 + $0x78] sm:$0xff]  ;;  %v223_v46 = vld [vmem:[%s494_s1] ss:$0 sm:$0xff]  ;;  %s396_s1 = smov [#allocation8]  }
  0x2d   :  { %67 = vadd.xlane.f32.xlu1 %v64_v6  ;;  %v307_v27 = vpack.c.bf16 %v120_v26, %v119_v25  ;;  %v224_v48 = vld [vmem:[%s495_s2] ss:$0 sm:$0xff]  ;;  %s210_s23 = sshll.u32 %s396_s1, 4  ;;  %s211_s23 = int_to_ptr.vmem [resolvable:$true] %s210_s23 }
  0x2e   :  { %v225_v56 = vld [vmem:[%s497_s4] ss:$0 sm:$0xff]  ;;  %s364_s2 = scalar_lea.vmem %s211_s23, 256  ;;  %p369_p3 = scmp.lt.s32.totalorder %s211_s23, %s211_s23 }
  0x2f   :  { %286 = vmatpush3.bf16.msra.mxu0 %v283_v9  ;;  %p365_p2 = scmp.ne.s32.totalorder %s211_s23, %s364_s2  ;;  %p370_p4 = scmp.lt.s32.totalorder %s364_s2, %s364_s2 }
  0x30   :  { %288 = vmatprep.subr.bf16.mxu0 %v287_v12 }
  0x31   :  { %p371_p5 = por %p370_p4, %p369_p3 }
  0x33   :  { %290 = vmatpush3.bf16.msra.mxu0 %v287_v12  ;;  %p372_p6 = pnand %p371_p5, %p365_p2 }
  0x34   :  { %292 = vmatprep.subr.bf16.mxu0 %v291_v15 }
  0x37   :  { %294 = vmatpush3.bf16.msra.mxu0 %v291_v15 }
  0x38   :  { %296 = vmatprep.subr.bf16.mxu0 %v295_v18 }
  0x3b   :  { %298 = vmatpush3.bf16.msra.mxu0 %v295_v18 }
  0x3c   :  { %300 = vmatprep.subr.bf16.mxu0 %v299_v22 }
  0x3f   :  { %302 = vmatpush3.bf16.msra.mxu0 %v299_v22 }
  0x40   :  { %304 = vmatprep.subr.bf16.mxu0 %v303_v24 }
  0x43   :  { %306 = vmatpush3.bf16.msra.mxu0 %v303_v24 }
  0x44   :  { %308 = vmatprep.subr.bf16.mxu0 %v307_v27 }
  0x47   :  { %310 = vmatpush3.bf16.msra.mxu0 %v307_v27 }
  0xb4   :  { %v58_v28 = vpop.xlane.xlu0 %57 }
  0xb5   :  { %v61_v29 = vmul.f32 0.03125, %v58_v28 }
  0xb6   :  { %v66_v30 = vpop.xlane.xlu1 %65 }
  0xb7   :  { %v71_v31 = vmul.f32 %v61_v29, %v61_v29  ;;  %v69_v32 = vmul.f32 0.03125, %v66_v30  ;;  %v77_v44 = vsub.f32 %v457_v0, %v61_v29 }
  0xb8   :  { %v60_v33 = vpop.xlane.xlu0 %59 }
  0xb9   :  { %v73_v34 = vsub.f32 %v69_v32, %v71_v31  ;;  %v62_v35 = vmul.f32 0.03125, %v60_v33 }
  0xba   :  { %v68_v36 = vpop.xlane.xlu1 %67 }
  0xbb   :  { %v75_v37 = vmax.f32 %v73_v34, 0.0  ;;  %v72_v38 = vmul.f32 %v62_v35, %v62_v35  ;;  %v70_v39 = vmul.f32 0.03125, %v68_v36  ;;  %v78_v49 = vsub.f32 %v459_v1, %v62_v35 }
  0xbd   :  { %v79_v40 = vadd.f32 1e-05, %v75_v37  ;;  %v74_v41 = vsub.f32 %v70_v39, %v72_v38 }
  0xbf   :  { %316 = vrsqrt.f32 %v79_v40  ;;  %v76_v42 = vmax.f32 %v74_v41, 0.0 }
  0xc1   :  { %v80_v43 = vadd.f32 1e-05, %v76_v42 }
  0xc3   :  { %318 = vrsqrt.f32 %v80_v43 }
  0xc9   :  { %v317_v45 = vpop.eup %316 }
  0xca   :  { %v83_v47 = vmul.f32 %v317_v45, %v77_v44 }
  0xcc   :  { %v91_v50 = vmul.f32 %v223_v46, %v83_v47 }
  0xcd   :  { %v319_v51 = vpop.eup %318 }
  0xce   :  { %v84_v52 = vmul.f32 %v319_v51, %v78_v49  ;;  %v99_v53 = vadd.f32 %v224_v48, %v91_v50 }
  0xd0   :  { %v92_v54 = vmul.f32 %v223_v46, %v84_v52  ;;  %276 = vmatprep.mubr.f32.mxu0 %v99_v53 }
  0xd2   :  { %v100_v55 = vadd.f32 %v224_v48, %v92_v54 }
  0xd4   :  { %277 = vmatmul.mubr.f32.vlgmr.msra.gmra.mrb[0].mxu0 %v100_v55 }
 0x1a7   :  { %v278_v57 = vpop.f32.mrb[0].mxu0 }
 0x1a8   :  { %v200_v58 = vadd.f32 %v278_v57, %v225_v56  ;;  %v194_v59 = vpop.f32.mrb[1].mxu0 }
 0x1a9   :  { %v195_v60 = vadd.f32 %v225_v56, %v194_v59 }
 0x1aa   :  { %204 = vst [vmem:[#allocation8 + $0x8] sm:$0xff] %v200_v58 }
 0x1ab   :  { %203 = vst [vmem:[#allocation8] sm:$0xff] %v195_v60 }
 0x1ac   :  { %375 = shalt.err (!%p372_p6)
}
 0x1ad   :  { %s376_s4 = scalar_lea.hbm %s498_s5, 256 }
 0x1ae   :  { %p377_p7 = scmp.ne.s32.totalorder %s498_s5, %s376_s4  ;;  %p380_p8 = scmp.lt.u32.totalorder %s376_s4, %s498_s5 }
 0x1b0   :  { %p382_p9 = pnand %p380_p8, %p377_p7 }
 0x1b2   :  { %385 = shalt.err (!%p382_p9)
}
 0x1b3   :  { %216 = dma.vmem_to_hbm [thread:$0]  %s211_s23, 256, %s498_s5, [#allocation5], %s393_s28, %s393_s28, %s394_s29  }
 0x1b4   :  { %390 = dma.done.wait [#allocation5], 256  }
 0x1b5   :  { %391 = vsyncadd [#allocation5], 4294967040 }
 0x1b6   :  { %220 = vsyncpa [#allocation4], 1 }
 0x1b7   :  { %221 = vsyncpa [#allocation7], 1 }
 0x1b8   :  { %222 = vsyncpa [#allocation5], 1 }

</bundles_post_ra>
